<compile_context>
chip_gen: v7x
topology: tpu7x:2x2x1
jax: 0.10.0
libtpu: 0.0.40
codegen_flags: <defaults>
</compile_context>

<pallas_src>
import jax
import jax.numpy as jnp
from jax.experimental import pallas as pl
from jax.experimental.pallas import tpu as pltpu


def _round_up(v, m):
    return ((v + m - 1) // m) * m


def _vmem_step_bytes(tm, tn, K, r, out_bytes=4):
    """Approximate double-buffered per-grid-step VMEM footprint."""
    x_b = tm * K * 2                        # bf16 activations tile
    ax_b = tm * r * 2                       # bf16 LoRA down-projection tile
    qw_b = K * tn * 1                       # int8 weight tile (dominant stream)
    vec_b = tn * (4 + 4) + r * tn * 2       # scales + bias + LoRA B tile
    o_b = tm * tn * out_bytes               # output tile
    return 2 * (x_b + ax_b + qw_b + vec_b + o_b)


def _quant_lora_kernel(x_ref, ax_ref, qw_ref, sc_ref, bias_ref, b_ref, o_ref):
    # Base quantized matmul: int8 weight tile -> bf16 on the fly (lossless cast),
    # per-output-channel scale applied AFTER the K contraction (commutes with the
    # K-sum), f32 MXU accumulation.
    base = jnp.dot(x_ref[...], qw_ref[...].astype(jnp.bfloat16),
                   preferred_element_type=jnp.float32)                    # (tm, tn)
    # LoRA up projection (scaling already folded into B during weight prep;
    # down projection x @ A precomputed in the wrapper).
    lora = jnp.dot(ax_ref[...], b_ref[...], preferred_element_type=jnp.float32)
    # Fused epilogue, single lane-dense store.
    o_ref[...] = (base * sc_ref[...] + bias_ref[...] + lora).astype(o_ref.dtype)


def prepare_quant_lora_weights(qweight_i8, scales, bias, lora_a, lora_b, scaling,
                               *, tn_max=512, tm_max=256, vmem_budget=36 << 20):
    """One-time weight-side preprocessing.  Call once at weight-load time, NOT per
    forward: pads N once, folds the LoRA scaling into B, and casts to MXU dtypes."""
    K, N = qweight_i8.shape
    r = lora_a.shape[1]

    # Pick tn: as large as possible (multiple of 128), shrunk only if the
    # double-buffered working set (with the max tm) would not fit the VMEM budget.
    tn = min(tn_max, _round_up(N, 128))
    while tn > 128 and _vmem_step_bytes(tm_max, tn, K, r) > vmem_budget:
        tn //= 2

    n_pad = _round_up(N, tn)
    qw_p = jnp.pad(qweight_i8.astype(jnp.int8), ((0, 0), (0, n_pad - N)))
    sc_p = jnp.pad(scales.reshape(1, N).astype(jnp.float32), ((0, 0), (0, n_pad - N)))
    bi_p = jnp.pad(bias.reshape(1, N).astype(jnp.float32), ((0, 0), (0, n_pad - N)))
    a_bf = lora_a.astype(jnp.bfloat16)                                     # (K, r)
    b_p = jnp.pad((lora_b * jnp.float32(scaling)).astype(jnp.bfloat16),
                  ((0, 0), (0, n_pad - N)))                                # (r, n_pad)

    return dict(qw=qw_p, scales=sc_p, bias=bi_p, lora_a=a_bf, lora_b=b_p,
                K=K, N=N, n_pad=n_pad, r=r, tn=tn, tm_max=tm_max,
                vmem_budget=vmem_budget)


def quant_lora_linear(x2d, weights, *, out_dtype=jnp.float32, weight_buffers=2):
    """x2d: (M, K) f32.  `weights` comes from prepare_quant_lora_weights()."""
    M, K = x2d.shape
    assert K == weights["K"]
    N, n_pad, r, tn = weights["N"], weights["n_pad"], weights["r"], weights["tn"]

    # Activation-side prep (per call, cheap): cast x to bf16 once (halves x DMA and
    # removes the per-N-tile cast from the kernel) and compute the tiny LoRA
    # down-projection as an (M, r) XLA matmul so the kernel has no scratch carry.
    x_bf = x2d.astype(jnp.bfloat16)
    ax = jnp.dot(x_bf, weights["lora_a"],
                 preferred_element_type=jnp.float32).astype(jnp.bfloat16)  # (M, r)

    out_bytes = jnp.dtype(out_dtype).itemsize
    tm = min(weights["tm_max"], _round_up(M, 8))
    while tm > 8 and _vmem_step_bytes(tm, tn, K, r, out_bytes) > weights["vmem_budget"]:
        tm = max(8, tm // 2)

    m_pad = _round_up(M, tm)
    x_p = jnp.pad(x_bf, ((0, m_pad - M), (0, 0)))
    ax_p = jnp.pad(ax, ((0, m_pad - M), (0, 0)))

    grid = (m_pad // tm, n_pad // tn)

    # Explicit VMEM limit: >= 32 MiB (v5e's scoped default is only 16 MiB), capped
    # at 48 MiB to stay safe on v7x's 64 MiB physical VMEM.
    vmem_limit = int(min(48 << 20,
                         max(32 << 20,
                             _vmem_step_bytes(tm, tn, K, r, out_bytes) + (8 << 20))))

    qw_spec_kwargs = {}
    if weight_buffers > 2:   # optional deeper pipelining on the dominant weight stream
        qw_spec_kwargs["pipeline_mode"] = pl.Buffered(weight_buffers)

    cost = pl.CostEstimate(
        flops=2 * m_pad * n_pad * (K + r),
        transcendentals=0,
        bytes_accessed=(m_pad * K * 2 + m_pad * r * 2                      # x, ax
                        + grid[0] * (K * n_pad + r * n_pad * 2 + n_pad * 8)  # weights
                        + m_pad * n_pad * out_bytes),                      # output
    )

    out_p = pl.pallas_call(
        _quant_lora_kernel,
        out_shape=jax.ShapeDtypeStruct((m_pad, n_pad), out_dtype),
        grid_spec=pltpu.PrefetchScalarGridSpec(
            num_scalar_prefetch=0,
            grid=grid,
            in_specs=[
                pl.BlockSpec((tm, K), lambda i, j: (i, 0)),                 # x (bf16)
                pl.BlockSpec((tm, r), lambda i, j: (i, 0)),                 # x @ A (bf16)
                pl.BlockSpec((K, tn), lambda i, j: (0, j), **qw_spec_kwargs),  # int8 weight
                pl.BlockSpec((1, tn), lambda i, j: (0, j)),                 # scales
                pl.BlockSpec((1, tn), lambda i, j: (0, j)),                 # bias
                pl.BlockSpec((r, tn), lambda i, j: (0, j)),                 # LoRA B (pre-scaled)
            ],
            out_specs=pl.BlockSpec((tm, tn), lambda i, j: (i, j)),
        ),
        compiler_params=pltpu.CompilerParams(
            # All output tiles are independent -> both axes parallel (megacore /
            # v7x 2-TC sharding works even for single-M-tile decode shapes).
            dimension_semantics=("parallel", "parallel"),
            vmem_limit_bytes=vmem_limit,
        ),
        cost_estimate=cost,
    )(x_p, ax_p, weights["qw"], weights["scales"], weights["bias"], weights["lora_b"])

    return out_p[:M, :N]


if __name__ == "__main__":
    # Small shapes consistent with the module's forward.
    batch, seq = 2, 8
    in_features, out_features = 32, 32
    r, lora_alpha = 8, 16
    scaling = lora_alpha / r            # self.scaling[adapter]
    # lora_dropout p = 0.0 -> identity at inference.

    key = jax.random.PRNGKey(0)
    k_x, k_qw, k_sc, k_bi, k_a, k_b = jax.random.split(key, 6)

    x = jax.random.normal(k_x, (batch, seq, in_features), dtype=jnp.float32)
    qweight_oi = jax.random.randint(k_qw, (out_features, in_features), -128, 128,
                                    dtype=jnp.int32)
    scales = jax.random.uniform(k_sc, (1, out_features), dtype=jnp.float32) * 0.02 + 0.005
    bias = jax.random.normal(k_bi, (1, out_features), dtype=jnp.float32) * 0.1
    lora_A_oi = jax.random.normal(k_a, (r, in_features), dtype=jnp.float32) * 0.1   # (r, in)
    lora_B_oi = jax.random.normal(k_b, (out_features, r), dtype=jnp.float32) * 0.1  # (out, r)

    # Transpose PyTorch (out, in) layouts to kernel-friendly (in, out); ship the
    # quantized weight as int8 (values are in int8 range).
    qweight = qweight_oi.T.astype(jnp.int8)   # (K, N) int8
    lora_a = lora_A_oi.T                      # (K, r)
    lora_b = lora_B_oi.T                      # (r, N)

    # One-time weight-side preprocessing (padding / casts / scaling fold).
    weights = prepare_quant_lora_weights(qweight, scales, bias, lora_a, lora_b, scaling)

    x2d = x.reshape(batch * seq, in_features)
    out2d = quant_lora_linear(x2d, weights)
    out = out2d.reshape(batch, seq, out_features)
    jax.block_until_ready(out)

    # Reference 1: same bf16 operand rounding as the kernel, f32 accumulation.
    x_bf = x2d.astype(jnp.bfloat16)
    w_bf = qweight.astype(jnp.bfloat16)
    a_bf = lora_a.astype(jnp.bfloat16)
    b_bf = (lora_b * scaling).astype(jnp.bfloat16)
    base = jnp.dot(x_bf, w_bf, preferred_element_type=jnp.float32) * scales + bias
    ax = jnp.dot(x_bf, a_bf, preferred_element_type=jnp.float32).astype(jnp.bfloat16)
    ref = base + jnp.dot(ax, b_bf, preferred_element_type=jnp.float32)
    ref = ref.reshape(batch, seq, out_features)
    assert jnp.allclose(out, ref, atol=1e-2, rtol=1e-2), "mismatch vs bf16 reference"

    # Reference 2: full-f32 math (loose tolerance — bf16 activation rounding only).
    w_deq = qweight.astype(jnp.float32) * scales
    ref_f32 = x2d @ w_deq + bias + (x2d @ lora_a @ lora_b) * scaling
    ref_f32 = ref_f32.reshape(batch, seq, out_features)
    assert jnp.allclose(out, ref_f32, atol=0.5, rtol=0.05), "mismatch vs f32 reference"

    print("KERNEL_OK")
</pallas_src>

<mosaic_0001>
module attributes {stable_mosaic.version = 11 : i64} {
  func.func @_quant_lora_kernel(%arg0: i32, %arg1: i32, %arg2: memref<16x32xbf16, #tpu.memory_space<vmem>>, %arg3: memref<16x8xbf16, #tpu.memory_space<vmem>>, %arg4: memref<32x128xi8, #tpu.memory_space<vmem>>, %arg5: memref<1x128xf32, #tpu.memory_space<vmem>>, %arg6: memref<1x128xf32, #tpu.memory_space<vmem>>, %arg7: memref<8x128xbf16, #tpu.memory_space<vmem>>, %arg8: memref<16x128xf32, #tpu.memory_space<vmem>>) attributes {dimension_semantics = [#tpu.dimension_semantics<parallel>, #tpu.dimension_semantics<parallel>], iteration_bounds = array<i64: 1, 1>, scalar_prefetch = 0 : i64, scratch_operands = 0 : i64, tpu.core_type = #tpu.core_type<tc>, window_params = [{transform_indices = @transform_0, window_bounds = array<i64: 16, 32>}, {transform_indices = @transform_1, window_bounds = array<i64: 16, 8>}, {transform_indices = @transform_2, window_bounds = array<i64: 32, 128>}, {transform_indices = @transform_3, window_bounds = array<i64: 1, 128>}, {transform_indices = @transform_4, window_bounds = array<i64: 1, 128>}, {transform_indices = @transform_5, window_bounds = array<i64: 8, 128>}, {transform_indices = @transform_6, window_bounds = array<i64: 16, 128>}]} {
    %c0 = arith.constant 0 : index
    %c0_0 = arith.constant 0 : index
    %0 = vector.load %arg2[%c0, %c0_0] : memref<16x32xbf16, #tpu.memory_space<vmem>>, vector<16x32xbf16>
    %c0_1 = arith.constant 0 : index
    %c0_2 = arith.constant 0 : index
    %1 = vector.load %arg4[%c0_1, %c0_2] : memref<32x128xi8, #tpu.memory_space<vmem>>, vector<32x128xi8>
    %2 = arith.sitofp %1 : vector<32x128xi8> to vector<32x128xbf16>
    %cst = arith.constant dense<0.000000e+00> : vector<16x128xf32>
    %3 = tpu.matmul %0, %2, %cst {dimension_numbers = #tpu.dot_dimension_numbers<[1], [0], [0], [1], [0, 0, 1, 1], [], []>} : vector<16x32xbf16>, vector<32x128xbf16>, vector<16x128xf32> -> vector<16x128xf32>
    %c0_3 = arith.constant 0 : index
    %c0_4 = arith.constant 0 : index
    %4 = vector.load %arg3[%c0_3, %c0_4] : memref<16x8xbf16, #tpu.memory_space<vmem>>, vector<16x8xbf16>
    %c0_5 = arith.constant 0 : index
    %c0_6 = arith.constant 0 : index
    %5 = vector.load %arg7[%c0_5, %c0_6] : memref<8x128xbf16, #tpu.memory_space<vmem>>, vector<8x128xbf16>
    %cst_7 = arith.constant dense<0.000000e+00> : vector<16x128xf32>
    %6 = tpu.matmul %4, %5, %cst_7 {dimension_numbers = #tpu.dot_dimension_numbers<[1], [0], [0], [1], [0, 0, 1, 1], [], []>} : vector<16x8xbf16>, vector<8x128xbf16>, vector<16x128xf32> -> vector<16x128xf32>
    %c0_8 = arith.constant 0 : index
    %c0_9 = arith.constant 0 : index
    %7 = vector.load %arg5[%c0_8, %c0_9] : memref<1x128xf32, #tpu.memory_space<vmem>>, vector<1x128xf32>
    %8 = vector.broadcast %7 : vector<1x128xf32> to vector<16x128xf32>
    %9 = arith.mulf %3, %8 : vector<16x128xf32>
    %c0_10 = arith.constant 0 : index
    %c0_11 = arith.constant 0 : index
    %10 = vector.load %arg6[%c0_10, %c0_11] : memref<1x128xf32, #tpu.memory_space<vmem>>, vector<1x128xf32>
    %11 = vector.broadcast %10 : vector<1x128xf32> to vector<16x128xf32>
    %12 = arith.addf %9, %11 : vector<16x128xf32>
    %13 = arith.addf %12, %6 : vector<16x128xf32>
    %c0_12 = arith.constant 0 : index
    %c0_13 = arith.constant 0 : index
    %14 = vector.load %arg8[%c0_12, %c0_13] : memref<16x128xf32, #tpu.memory_space<vmem>>, vector<16x128xf32>
    tpu.vector_store %arg8[%c0_12, %c0_13], %13 {strides = array<i32>} : memref<16x128xf32, #tpu.memory_space<vmem>>, vector<16x128xf32>,
    return
  }
  func.func @transform_0(%arg0: i32, %arg1: i32) -> (i32, i32) {
    %c0_i32 = arith.constant 0 : i32
    %c0_i32_0 = arith.constant 0 : i32
    return %arg0, %c0_i32 : i32, i32
  }
  func.func @transform_1(%arg0: i32, %arg1: i32) -> (i32, i32) {
    %c0_i32 = arith.constant 0 : i32
    %c0_i32_0 = arith.constant 0 : i32
    return %arg0, %c0_i32 : i32, i32
  }
  func.func @transform_2(%arg0: i32, %arg1: i32) -> (i32, i32) {
    %c0_i32 = arith.constant 0 : i32
    %c0_i32_0 = arith.constant 0 : i32
    return %c0_i32, %arg1 : i32, i32
  }
  func.func @transform_3(%arg0: i32, %arg1: i32) -> (i32, i32) {
    %c0_i32 = arith.constant 0 : i32
    %c0_i32_0 = arith.constant 0 : i32
    return %c0_i32, %arg1 : i32, i32
  }
  func.func @transform_4(%arg0: i32, %arg1: i32) -> (i32, i32) {
    %c0_i32 = arith.constant 0 : i32
    %c0_i32_0 = arith.constant 0 : i32
    return %c0_i32, %arg1 : i32, i32
  }
  func.func @transform_5(%arg0: i32, %arg1: i32) -> (i32, i32) {
    %c0_i32 = arith.constant 0 : i32
    %c0_i32_0 = arith.constant 0 : i32
    return %c0_i32, %arg1 : i32, i32
  }
  func.func @transform_6(%arg0: i32, %arg1: i32) -> (i32, i32) {
    %c0_i32 = arith.constant 0 : i32
    return %arg0, %arg1 : i32, i32
  }
}

</mosaic_0001>

<bundles_post_ra>
// kernel: tpu_custom_call.1
= control target key start
LH: loop header
LB: loop body
LE: loop exit
PB: predicated region body
PF: predicated region fallthrough
CT: control target
= control target key end

     0   :  { %vm92_vm0 = vcmask 1043456   ;;  %v231_v2 = vmov 0.0   ;;  %vm232_vm1 = vmmov 0   ;;  %vm88_vm2 = vcmask 64512   ;;  %s301_s0 = inlined_call_operand.vmem [shape: bf16[16,32], index: 0, kind: input, shape index: {}]   ;;  %s302_s1 = inlined_call_operand.vmem [shape: bf16[16,8], index: 1, kind: input, shape index: {}]   ;;  %s303_s2 = inlined_call_operand.vmem [shape: s8[32,128], index: 2, kind: input, shape index: {}]   ;;  %s304_s3 = inlined_call_operand.vmem [shape: f32[1,128], index: 3, kind: input, shape index: {}]   ;;  %s305_s4 = inlined_call_operand.vmem [shape: f32[1,128], index: 4, kind: input, shape index: {}]   ;;  %s306_s5 = inlined_call_operand.vmem [shape: bf16[8,128], index: 5, kind: input, shape index: {}]   ;;  %s307_s6 = inlined_call_operand.hbm [shape: f32[16,128], index: 6, kind: output, shape index: {}]  }
   0x1   :  { %v27_v0 = vld [vmem:[%s303_s2] sm:$0xff]  ;;  %186 = vmatprep.subr.bf16.mxu0 %v231_v2  ;;  %194 = vmatprep.subr.bf16.mxu1 %v231_v2 }
   0x2   :  { %v82_v1 = vld [vmem:[%s306_s5] sm:$0xf]  ;;  %v28_v3 = vunpack.c.l.s8.bf16 %v27_v0  ;;  %190 = vmatprep.mubr.msk.bf16.mxu0 %vm232_vm1, %v231_v2  ;;  %v29_v6 = vunpack.c.h.s8.bf16 %v27_v0  ;;  %196 = vmatprep.mubr.msk.bf16.mxu1 %vm232_vm1, %v231_v2 }
   0x3   :  { %v94_v4 = vsel %vm92_vm0, %v82_v1, 0  ;;  %v206_v5 = vld [vmem:[%s302_s1] sm:$0xff]  }
   0x4   :  { %195 = vmatpush3.bf16.msra.mxu1 %v94_v4  ;;  %187 = vmatpush3.bf16.msra.mxu0 %v28_v3 }
   0x5   :  { %11 = vsyncpa [#allocation3], 0  ;;  %188 = vmatprep.subr.bf16.mxu0 %v231_v2  ;;  %v205_v7 = vld [vmem:[%s301_s0] sm:$0xff]   ;;  %vm35_vm3 = vcmask 261120   ;;  %s233_s0 = smov [#allocation2]  }
   0x6   :  { %v179_v11 = vld [vmem:[%s304_s3] ss:$0 sm:$0xff]  ;;  %s164_s30 = sshll.u32 %s233_s0, 4  ;;  %s165_s30 = int_to_ptr.vmem [resolvable:$true] %s164_s30 }
   0x7   :  { %197 = vmatmul.mubr.msk.bf16.vlgmr.msra.gmra.mrb[0].mxu1 %vm88_vm2, %v206_v5  ;;  %v180_v14 = vld [vmem:[%s305_s4] ss:$0 sm:$0xff]  ;;  %s207_s3 = scalar_lea.vmem %s165_s30, 256  ;;  %p212_p1 = scmp.lt.s32.totalorder %s165_s30, %s165_s30 }
   0x8   :  { %189 = vmatpush3.bf16.msra.mxu0 %v29_v6  ;;  %p208_p0 = scmp.ne.s32.totalorder %s165_s30, %s207_s3  ;;  %p213_p2 = scmp.lt.s32.totalorder %s207_s3, %s207_s3 }
   0xa   :  { %p214_p3 = por %p213_p2, %p212_p1 }
   0xb   :  { %191 = vmatmul.mubr.msk.bf16.vlgmr.msra.gmra.mrb[0].mxu0 %vm35_vm3, %v205_v7 }
   0xc   :  { %p215_p4 = pnand %p214_p3, %p208_p0 }
  0xda   :  { %v130_v8 = vpop.f32.mrb[0].mxu1 }
  0xdb   :  { %v198_v9 = vpop.f32.mrb[1].mxu1 }
  0xdc   :  { %v133_v10 = vpop.f32.mrb[2].mxu1 }
  0xdd   :  { %v199_v12 = vpop.f32.mrb[3].mxu1 }
  0xde   :  { %v73_v13 = vpop.f32.mrb[0].mxu0 }
  0xdf   :  { %v144_v15 = vmul.f32 %v179_v11, %v73_v13  ;;  %v192_v16 = vpop.f32.mrb[1].mxu0 }
  0xe0   :  { %v76_v17 = vpop.f32.mrb[2].mxu0 }
  0xe1   :  { %v153_v18 = vadd.f32 %v180_v14, %v144_v15  ;;  %v145_v19 = vmul.f32 %v179_v11, %v76_v17  ;;  %v193_v20 = vpop.f32.mrb[3].mxu0 }
  0xe3   :  { %v155_v21 = vadd.f32 %v153_v18, %v130_v8  ;;  %v154_v22 = vadd.f32 %v180_v14, %v145_v19 }
  0xe5   :  { %157 = vst [vmem:[#allocation2] sm:$0xff] %v155_v21  ;;  %v156_v23 = vadd.f32 %v154_v22, %v133_v10 }
  0xe7   :  { %158 = vst [vmem:[#allocation2 + $0x8] sm:$0xff] %v156_v23 }
  0xe8   :  { %218 = shalt.err (!%p215_p4)
}
  0xe9   :  { %s219_s8 = scalar_lea.hbm %s307_s6, 256 }
  0xea   :  { %p220_p5 = scmp.ne.s32.totalorder %s307_s6, %s219_s8  ;;  %p223_p6 = scmp.lt.u32.totalorder %s219_s8, %s307_s6 }
  0xec   :  { %p225_p7 = pnand %p223_p6, %p220_p5 }
  0xee   :  { %228 = shalt.err (!%p225_p7)
}
  0xef   :  { %s234_s13 = smov 128   ;;  %s235_s14 = smov 8  }
  0xf0   :  { %170 = dma.vmem_to_hbm [thread:$0]  %s165_s30, 256, %s307_s6, [#allocation3], %s234_s13, %s234_s13, %s235_s14  }
  0xf1   :  { %229 = dma.done.wait [#allocation3], 256  }
  0xf2   :  { %230 = vsyncadd [#allocation3], 4294967040 }
  0xf3   :  { %174 = vsyncpa [#allocation3], 1 }

</bundles_post_ra>
